<compile_context>
chip_gen: v7x
topology: tpu7x:2x2x1
jax: 0.10.0
libtpu: 0.0.40
codegen_flags: <defaults>
</compile_context>

<pallas_src>
import math

import jax
import jax.numpy as jnp
from jax.experimental import pallas as pl
from jax.experimental.pallas import tpu as pltpu


def _round_up(x, m):
    return ((x + m - 1) // m) * m


def fourier_kernel(fx_ref, fy_ref, off_ref, coords_ref, out_ref):
    # fx_ref / fy_ref / off_ref: [4*C4, 1]  per-output-channel params (resident)
    # coords_ref:                [2, T]     flattened spatial tile (row0=x, row1=y)
    # out_ref:                   [4*C4, T]  channel-major output tile
    cx = coords_ref[0:1, :]                     # [1, T]
    cy = coords_ref[1:2, :]                     # [1, T]
    # Broadcast multiply-adds on the VPU ((4C4,1) x (1,T) -> (4C4,T)); no MXU.
    phase = fx_ref[...] * cx + fy_ref[...] * cy + off_ref[...]
    # One transcendental per output element; cos rows carry a +pi/2 offset.
    out_ref[...] = jnp.sin(phase).astype(out_ref.dtype)


def fourier_features(coords, freq_multiplier, *, max_tile=32768,
                     vmem_budget_bytes=12 << 20, out_dtype=jnp.float32):
    """coords: [B, 2, H, W] with B == 1 (the registered-buffer broadcast in the
    PyTorch module requires B == 1 or B == C4; B == 1 is the intended use)."""
    B, two, H, W = coords.shape
    assert two == 2 and B == 1
    c4 = freq_multiplier.shape[0]
    oc = 4 * c4
    hw = H * W

    f = freq_multiplier.astype(jnp.float32)
    zeros = jnp.zeros((c4,), jnp.float32)
    half_pi = jnp.full((c4,), jnp.float32(math.pi / 2.0))
    # Per-output-channel coefficients in PyTorch channel order 4k+{0,1,2,3} =
    # {sin(fx_k*x), sin(fy_k*y), cos(fx_k*x), cos(fy_k*y)}.
    fx = jnp.stack([f[:, 0], zeros, f[:, 0], zeros], axis=1).reshape(oc, 1)
    fy = jnp.stack([zeros, f[:, 1], zeros, f[:, 1]], axis=1).reshape(oc, 1)
    off = jnp.stack([zeros, zeros, half_pi, half_pi], axis=1).reshape(oc, 1)

    coords2d = coords.reshape(2, hw).astype(jnp.float32)
    out_bytes = jnp.dtype(out_dtype).itemsize

    # --- tile / grid selection ------------------------------------------------
    # Pallas double-buffers the coords tile and the output tile each step:
    #   VMEM/step ~ 2*(2*T*4) + 2*(oc*T*out_bytes)
    # Pick the largest lane tile that fits the budget (per-step overhead is
    # ~0.35us, so bigger tiles amortize better), capped at max_tile.
    per_lane = 2 * (2 * 4 + oc * out_bytes)
    tile_cap = max(128, (vmem_budget_bytes // per_lane) // 128 * 128)
    tile_cap = min(tile_cap, max_tile)

    hw_pad = _round_up(hw, 128)
    grid_n = max(1, pl.cdiv(hw_pad, tile_cap))
    if grid_n == 1 and hw_pad >= 256:
        grid_n = 2                      # let v7x's 2 TensorCores both work
    tile = _round_up(pl.cdiv(hw_pad, grid_n), 128)
    hw_pad = tile * grid_n
    if hw_pad != hw:
        coords2d = jnp.pad(coords2d, ((0, 0), (0, hw_pad - hw)))

    cost = pl.CostEstimate(
        flops=5 * oc * hw_pad,
        transcendentals=oc * hw_pad,
        bytes_accessed=2 * hw_pad * 4 + oc * hw_pad * out_bytes,
    )

    out = pl.pallas_call(
        fourier_kernel,
        out_shape=jax.ShapeDtypeStruct((oc, hw_pad), out_dtype),
        grid_spec=pltpu.PrefetchScalarGridSpec(
            num_scalar_prefetch=0,
            grid=(grid_n,),
            in_specs=[
                pl.BlockSpec((oc, 1), lambda i: (0, 0)),      # fx (resident)
                pl.BlockSpec((oc, 1), lambda i: (0, 0)),      # fy (resident)
                pl.BlockSpec((oc, 1), lambda i: (0, 0)),      # off (resident)
                pl.BlockSpec((2, tile), lambda i: (0, i)),    # coords tile
            ],
            out_specs=pl.BlockSpec((oc, tile), lambda i: (0, i)),
        ),
        compiler_params=pltpu.CompilerParams(
            dimension_semantics=("parallel",)),
        cost_estimate=cost,
    )(fx, fy, off, coords2d)

    if hw_pad != hw:
        out = out[:, :hw]
    # (4*C4, HW) -> (1, 4*C4, H, W): contiguous row-major reshape, no copy.
    return out.reshape(1, oc, H, W)


def fourier_features_ref(coords, freq_multiplier):
    """Pure-JAX reference mirroring the PyTorch forward line by line."""
    c4 = freq_multiplier.shape[0]
    x = coords * freq_multiplier.reshape(c4, 2, 1, 1)
    feats = jnp.concatenate([jnp.sin(x), jnp.cos(x)], axis=1)
    return feats.reshape(-1, 4 * c4, coords.shape[2], coords.shape[3])


if __name__ == "__main__":
    out_channels = 32          # -> C4 = 8 frequency pairs
    input_scale = 10.0
    H = W = 16

    key = jax.random.PRNGKey(0)
    # Deterministic stand-in for the registered buffer: randn(C4, 2) * scale
    freq = jax.random.normal(key, (out_channels // 4, 2),
                             dtype=jnp.float32) * input_scale

    # Coordinate grid in [-1, 1], NCHW like the PyTorch module expects.
    ys, xs = jnp.meshgrid(jnp.linspace(-1.0, 1.0, H),
                          jnp.linspace(-1.0, 1.0, W), indexing="ij")
    coords = jnp.stack([xs, ys], axis=0)[None].astype(jnp.float32)  # [1,2,H,W]

    out = fourier_features(coords, freq)
    out = jax.block_until_ready(out)

    ref = fourier_features_ref(coords, freq)
    assert out.shape == (1, out_channels, H, W), out.shape
    assert jnp.allclose(out, ref, atol=1e-5, rtol=1e-5)
    print("KERNEL_OK")
</pallas_src>

<mosaic_0001>
module attributes {stable_mosaic.version = 11 : i64} {
  func.func @fourier_kernel(%arg0: i32, %arg1: memref<32x1xf32, #tpu.memory_space<vmem>>, %arg2: memref<32x1xf32, #tpu.memory_space<vmem>>, %arg3: memref<32x1xf32, #tpu.memory_space<vmem>>, %arg4: memref<2x128xf32, #tpu.memory_space<vmem>>, %arg5: memref<32x128xf32, #tpu.memory_space<vmem>>) attributes {dimension_semantics = [#tpu.dimension_semantics<parallel>], iteration_bounds = array<i64: 2>, scalar_prefetch = 0 : i64, scratch_operands = 0 : i64, tpu.core_type = #tpu.core_type<tc>, window_params = [{pipeline_mode = #tpu.pipeline_mode<synchronous>, transform_indices = @transform_0, window_bounds = array<i64: 32, 1>}, {pipeline_mode = #tpu.pipeline_mode<synchronous>, transform_indices = @transform_1, window_bounds = array<i64: 32, 1>}, {pipeline_mode = #tpu.pipeline_mode<synchronous>, transform_indices = @transform_2, window_bounds = array<i64: 32, 1>}, {transform_indices = @transform_3, window_bounds = array<i64: 2, 128>}, {transform_indices = @transform_4, window_bounds = array<i64: 32, 128>}]} {
    %c0 = arith.constant 0 : index
    %c0_0 = arith.constant 0 : index
    %0 = vector.load %arg4[%c0, %c0_0] : memref<2x128xf32, #tpu.memory_space<vmem>>, vector<1x128xf32>
    %c1 = arith.constant 1 : index
    %c0_1 = arith.constant 0 : index
    %1 = vector.load %arg4[%c1, %c0_1] : memref<2x128xf32, #tpu.memory_space<vmem>>, vector<1x128xf32>
    %c0_2 = arith.constant 0 : index
    %c0_3 = arith.constant 0 : index
    %2 = vector.load %arg1[%c0_2, %c0_3] : memref<32x1xf32, #tpu.memory_space<vmem>>, vector<32x1xf32>
    %3 = vector.broadcast %2 : vector<32x1xf32> to vector<32x128xf32>
    %4 = vector.broadcast %0 : vector<1x128xf32> to vector<32x128xf32>
    %5 = arith.mulf %3, %4 : vector<32x128xf32>
    %c0_4 = arith.constant 0 : index
    %c0_5 = arith.constant 0 : index
    %6 = vector.load %arg2[%c0_4, %c0_5] : memref<32x1xf32, #tpu.memory_space<vmem>>, vector<32x1xf32>
    %7 = vector.broadcast %6 : vector<32x1xf32> to vector<32x128xf32>
    %8 = vector.broadcast %1 : vector<1x128xf32> to vector<32x128xf32>
    %9 = arith.mulf %7, %8 : vector<32x128xf32>
    %10 = arith.addf %5, %9 : vector<32x128xf32>
    %c0_6 = arith.constant 0 : index
    %c0_7 = arith.constant 0 : index
    %11 = vector.load %arg3[%c0_6, %c0_7] : memref<32x1xf32, #tpu.memory_space<vmem>>, vector<32x1xf32>
    %12 = vector.broadcast %11 : vector<32x1xf32> to vector<32x128xf32>
    %13 = arith.addf %10, %12 : vector<32x128xf32>
    %14 = math.sin %13 : vector<32x128xf32>
    %c0_8 = arith.constant 0 : index
    %c0_9 = arith.constant 0 : index
    %15 = vector.load %arg5[%c0_8, %c0_9] : memref<32x128xf32, #tpu.memory_space<vmem>>, vector<32x128xf32>
    tpu.vector_store %arg5[%c0_8, %c0_9], %14 {strides = array<i32>} : memref<32x128xf32, #tpu.memory_space<vmem>>, vector<32x128xf32>,
    return
  }
  func.func @transform_0(%arg0: i32) -> (i32, i32) {
    %c0_i32 = arith.constant 0 : i32
    %c0_i32_0 = arith.constant 0 : i32
    %c0_i32_1 = arith.constant 0 : i32
    return %c0_i32, %c0_i32_0 : i32, i32
  }
  func.func @transform_1(%arg0: i32) -> (i32, i32) {
    %c0_i32 = arith.constant 0 : i32
    %c0_i32_0 = arith.constant 0 : i32
    %c0_i32_1 = arith.constant 0 : i32
    return %c0_i32, %c0_i32_0 : i32, i32
  }
  func.func @transform_2(%arg0: i32) -> (i32, i32) {
    %c0_i32 = arith.constant 0 : i32
    %c0_i32_0 = arith.constant 0 : i32
    %c0_i32_1 = arith.constant 0 : i32
    return %c0_i32, %c0_i32_0 : i32, i32
  }
  func.func @transform_3(%arg0: i32) -> (i32, i32) {
    %c0_i32 = arith.constant 0 : i32
    %c0_i32_0 = arith.constant 0 : i32
    return %c0_i32, %arg0 : i32, i32
  }
  func.func @transform_4(%arg0: i32) -> (i32, i32) {
    %c0_i32 = arith.constant 0 : i32
    %c0_i32_0 = arith.constant 0 : i32
    return %c0_i32, %arg0 : i32, i32
  }
}

</mosaic_0001>

<bundles_post_ra>
// kernel: tpu_custom_call.1
= control target key start
LH: loop header
LB: loop body
LE: loop exit
PB: predicated region body
PF: predicated region fallthrough
CT: control target
= control target key end

     0   :  { %9 = vsyncpa [#allocation3], 0  ;;  %s1430_s0 = inlined_call_operand.vmem [shape: f32[32,1], index: 0, kind: input, shape index: {}]   ;;  %s1431_s1 = inlined_call_operand.vmem [shape: f32[32,1], index: 1, kind: input, shape index: {}]   ;;  %s1432_s2 = inlined_call_operand.vmem [shape: f32[32,1], index: 2, kind: input, shape index: {}]   ;;  %s1433_s3 = inlined_call_operand.vmem [shape: f32[2,256], index: 3, kind: input, shape index: {}]   ;;  %s1434_s4 = inlined_call_operand.hbm [shape: f32[32,256], index: 4, kind: output, shape index: {}]  }
   0x1   :  { %11 = vsyncpa [#allocation3 + $0x1], 0  ;;  %s997_s15 = smov 0   ;;  %s999_s16 = smov 0  }
   0x2   :  { %s1001_s17 = smov 0   ;;  %s1003_s18 = smov 0  }
   0x3 LB: > { %s1018_s19 = sadd.s32 4294967295, %s959_s18   ;;  %s786_s20 = sadd.s32 4294967294, %s959_s18   ;;  %s959_s18 = sphi %s1003_s18, %s1444_s18   ;;  %s955_s17 = sphi %s1001_s17, %s1443_s17   ;;  %s951_s16 = sphi %s999_s16, %s1442_s16   ;;  %s947_s15 = sphi %s997_s15, %s1441_s15  }
   0x4   : > { %s1022_s21 = sadd.s32 1, %s959_s18   ;;  %s113_s22 = sadd.s32 1, %s955_s17 }
   0x5   : > { %s110_s23 = ssub.s32 %s959_s18, %s1022_s21  ;;  %p123_p0 = scmp.ne.s32.totalorder %s955_s17, %s951_s16 }
   0x6   : > { %p111_p1 = scmp.eq.s32.totalorder %s110_s23, 0  ;;  %p124_p2 = scmp.eq.s32.totalorder %s1018_s19, 1 }
   0x7   : > { %p129_p3 = scmp.ne.s32.totalorder %s951_s16, %s947_s15  ;;  %p130_p4 = scmp.eq.s32.totalorder %s786_s20, 1 }
   0x8   : > { %s1033_s24 = scalar_select %p111_p1, %s955_s17, %s113_s22  }
   0x9   : > { %p1035_p5 = por %p124_p2, %p123_p0  ;;  %p1039_p6 = por %p130_p4, %p129_p3 }
   0xa   : > { %p789_p7 = scmp.ge.s32.totalorder %s959_s18, 1  ;;  %p164_p8 = scmp.lt.s32.totalorder %s959_s18, 3 }
   0xc   : > { %p165_p9 = pnand %p789_p7, %p164_p8 }
   0xd   : > { %v197_v0 = vld [vmem:[%s1430_s0 + $0x10] sm:$0xff] (!%p165_p9)  ;;  %v195_v1 = vld [vmem:[%s1430_s0] sm:$0xff] (!%p165_p9)  ;;  %v961_v2 = vmov (!%p165_p9), 0   ;;  %v198_v3 = vld [vmem:[%s1430_s0 + $0x18] sm:$0xff] (!%p165_p9)  ;;  %p189_p10 = scmp.lt.s32.totalorder (!%p165_p9), %s1018_s19, 1  ;;  %s186_s13 = sand.u32 (!%p165_p9), 1, %s951_s16  }
   0xe   : > { %168 = sbr.rel (%p165_p9) target bundleno = 314 (0x13a), region = 36  ;;  %880 = vset.pattern.permute.xlu1 (!%p165_p9), %v961_v2  ;;  %879 = vset.pattern.permute.xlu0 (!%p165_p9), %v961_v2  ;;  %v196_v4 = vld [vmem:[%s1430_s0 + $0x8] sm:$0xff] (!%p165_p9)  ;;  %v227_v6 = vld [vmem:[%s1431_s1] sm:$0xff] (!%p165_p9)  ;;  %v230_v7 = vld [vmem:[%s1431_s1 + $0x18] sm:$0xff] (!%p165_p9)  ;;  %s790_s14 = sshll.u32 (!%p165_p9), %s186_s13, 5 }
   0xf   : > { %211 = vperm.xlu1 (!%p165_p9), %880, %v197_v0   ;;  %201 = vperm.xlu0 (!%p165_p9), %879, %v195_v1   ;;  %v228_v5 = vld [vmem:[%s1431_s1 + $0x8] sm:$0xff] (!%p165_p9)  ;;  %v229_v8 = vld [vmem:[%s1431_s1 + $0x10] sm:$0xff] (!%p165_p9)  ;;  %v263_v10 = vld [vmem:[%s1432_s2] sm:$0xff] (!%p165_p9)  ;;  %s1343_s20 = scalar_lea.vmem (!%p165_p9), [#allocation2], %s790_s14  ;;  %s811_s22 = sshll.u32 (!%p165_p9), %s1018_s19, 7 }
  0x10   : > { %v264_v9 = vld [vmem:[%s1432_s2 + $0x8] sm:$0xff] (!%p165_p9)  ;;  %v266_v11 = vld [vmem:[%s1432_s2 + $0x18] sm:$0xff] (!%p165_p9)  ;;  %v265_v12 = vld [vmem:[%s1432_s2 + $0x10] sm:$0xff] (!%p165_p9)  ;;  %s724_s23 = sshll.u32 (!%p165_p9), %s1343_s20, 4  ;;  %s1381_s29 = scalar_lea.hbm (!%p165_p9), %s1434_s4, %s811_s22  ;;  %s1383_s23 = int_to_ptr.vmem [resolvable:$true] %s724_s23 }
  0x11   : > { %s897_s30 = scalar_lea.vmem (!%p165_p9), %s1383_s23, 512  ;;  %s968_s5 = smov (!%p165_p9), [#allocation2]  }
  0x12   : > { %p898_p11 = scmp.ne.s32.totalorder (!%p165_p9), %s1383_s23, %s897_s30  ;;  %s901_s6 = sshll.u32 (!%p165_p9), %s968_s5, 4  ;;  %s902_s6 = int_to_ptr.vmem [resolvable:$false] %s901_s6 }
  0x13   : > { %216 = vperm.xlu1 (!%p165_p9), %880, %v198_v3   ;;  %206 = vperm.xlu0 (!%p165_p9), %879, %v196_v4   ;;  %v962_v3 = vmov (!%p165_p9), 683565275   ;;  %s903_s7 = scalar_lea.vmem (!%p165_p9), %s902_s6, 1024  ;;  %p904_p0 = scmp.lt.s32.totalorder (!%p165_p9), %s1383_s23, %s902_s6 }
  0x14   : > { %p899_p12 = pnand (!%p165_p9), %p898_p11, %p1035_p5  ;;  %p905_p1 = scmp.lt.s32.totalorder (!%p165_p9), %s903_s7, %s897_s30 }
  0x15   : > { %s190_s8 = scalar_select %p189_p10, %s1018_s19, 1 }
  0x16   : > { %s1389_s19 = scalar_lea.sflag [#allocation3], %s186_s13  ;;  %p900_p13 = pneg %p899_p12 }
  0x17   : > { %238 = vperm.xlu1 %880, %v228_v5   ;;  %233 = vperm.xlu0 %879, %v227_v6   ;;  %s791_s9 = sshll.u32 %s190_s8, 1  ;;  %p906_p2 = por %p905_p1, %p904_p0 }
  0x18   : > { %s192_s12 = scalar_lea.vmem %s1433_s3, %s791_s9 }
  0x19   : > { %v793_v18 = vld [vmem:[%s192_s12 + $0x1] ss:$0 sm:$0xff]  ;;  %v792_v20 = vld [vmem:[%s192_s12] ss:$0 sm:$0xff]  ;;  %p907_p3 = pnand %p906_p2, %p900_p13 }
  0x1b   : > { %248 = vperm.xlu1 %880, %v230_v7   ;;  %243 = vperm.xlu0 %879, %v229_v8   ;;  %v963_v7 = vmov 2475754826  }
  0x1f   : > { %274 = vperm.xlu1 %880, %v264_v9   ;;  %269 = vperm.xlu0 %879, %v263_v10   ;;  %v964_v9 = vmov 2131351028  }
  0x23   : > { %284 = vperm.xlu1 %880, %v266_v11   ;;  %279 = vperm.xlu0 %879, %v265_v12   ;;  %v965_v11 = vmov 2102212464  }
  0x8e   : > { %v212_v13 = vpop.permute.xlu1 %211  ;;  %v202_v14 = vpop.permute.xlu0 %201 }
  0x8f   : > { %v223_v25 = vmul.f32 %v792_v20, %v202_v14  ;;  %v225_v55 = vmul.f32 %v792_v20, %v212_v13  ;;  %v966_v13 = vmov 920167782  }
  0x92   : > { %v217_v15 = vpop.permute.xlu1 %216  ;;  %v207_v16 = vpop.permute.xlu0 %206 }
  0x93   : > { %v224_v26 = vmul.f32 %v792_v20, %v207_v16  ;;  %v226_v32 = vmul.f32 %v792_v20, %v217_v15  ;;  %v967_v20 = vmov 1326507024  }
  0x96   : > { %v239_v17 = vpop.permute.xlu1 %238  ;;  %v234_v19 = vpop.permute.xlu0 %233 }
  0x97   : > { %v256_v21 = vmul.f32 %v793_v18, %v239_v17  ;;  %v255_v22 = vmul.f32 %v793_v18, %v234_v19 }
  0x99   : > { %v260_v28 = vadd.f32 %v256_v21, %v224_v26  ;;  %v259_v29 = vadd.f32 %v255_v22, %v223_v25 }
  0x9a   : > { %v249_v23 = vpop.permute.xlu1 %248  ;;  %v244_v24 = vpop.permute.xlu0 %243 }
  0x9b   : > { %v258_v27 = vmul.f32 %v793_v18, %v249_v23  ;;  %v257_v49 = vmul.f32 %v793_v18, %v244_v24 }
  0x9d   : > { %v262_v37 = vadd.f32 %v258_v27, %v226_v32  ;;  %v1101_v61 = vadd.f32 %v257_v49, %v225_v55 }
  0x9e   : > { %v275_v30 = vpop.permute.xlu1 %274  ;;  %v270_v31 = vpop.permute.xlu0 %269 }
  0x9f   : > { %v1086_v33 = vadd.f32 %v275_v30, %v260_v28  ;;  %v1088_v34 = vadd.f32 %v270_v31, %v259_v29 }
  0xa1   : > { %v395_v35 = vand.u32 2147483647, %v1086_v33  ;;  %v398_v36 = vand.u32 2139095040, %v1086_v33  ;;  %v291_v38 = vand.u32 2147483647, %v1088_v34  ;;  %v294_v39 = vand.u32 2139095040, %v1088_v34 }
  0xa2   : > { %v285_v40 = vpop.permute.xlu1 %284  ;;  %vm397_vm13 = vcmp.lt.s32.totalorder %v1086_v33, 0 }
  0xa3   : > { %v399_v41 = vshrl.u32 %v398_v36, 23  ;;  %v1094_v42 = vadd.f32 %v285_v40, %v262_v37  ;;  %v402_v43 = vand.u32 8388607, %v395_v35  ;;  %v295_v44 = vshrl.u32 %v294_v39, 23 }
  0xa4   : > { %v298_v45 = vand.u32 8388607, %v291_v38  ;;  %vm1214_vm15 = vcmp.le.f32.partialorder %v395_v35, 0.7853982 }
  0xa5   : > { %v798_v46 = vadd.s32 4294967169, %v399_v41  ;;  %v794_v47 = vadd.s32 4294967169, %v295_v44  ;;  %v606_v48 = vand.u32 2139095040, %v1094_v42  ;;  %v403_v51 = vor.u32 8388608, %v402_v43 }
  0xa6   : > { %v299_v52 = vor.u32 8388608, %v298_v45  ;;  %v603_v1 = vand.u32 2147483647, %v1094_v42 }
  0xa7   : > { %v405_v50 = vadd.s32 1, %v798_v46  ;;  %v301_v53 = vadd.s32 1, %v794_v47  ;;  %v607_v54 = vshrl.u32 %v606_v48, 23  ;;  %v1103_v62 = vshll.u32 %v403_v51, 8 }
  0xa8   : > { %v1107_v0 = vshll.u32 %v299_v52, 8 }
  0xa9   : > { %vm406_vm0 = vcmp.gt.s32.totalorder %v405_v50, 0  ;;  %vm302_vm1 = vcmp.gt.s32.totalorder %v301_v53, 0  ;;  %v806_v57 = vadd.s32 4294967169, %v607_v54 }
  0xaa   : > { %v407_v56 = vsel %vm406_vm0, %v405_v50, 0  ;;  %v303_v60 = vsel %vm302_vm1, %v301_v53, 0 }
  0xab   : > { %v408_v58 = vshrl.u32 %v407_v56, 5  ;;  %v409_v59 = vand.u32 31, %v407_v56  ;;  %v1105_v63 = vshrl.u32 %v303_v60, 5  ;;  %v305_v5 = vand.u32 31, %v303_v60 }
  0xac   : > { %v1111_v6 = vadd.s32 1, %v806_v57 }
  0xad   : > { %v410_v2 = vsub.s32 32, %v409_v59  ;;  %v412_v4 = vshll.u32 %v962_v3, %v409_v59  ;;  %v415_v8 = vshll.u32 %v963_v7, %v409_v59  ;;  %v418_v10 = vshll.u32 %v964_v9, %v409_v59 }
  0xae   : > { %v421_v12 = vshll.u32 %v965_v11, %v409_v59  ;;  %v424_v14 = vshll.u32 %v966_v13, %v409_v59  ;;  %vm427_vm2 = vcmp.lt.s32.totalorder %v408_v58, 1  ;;  %vm428_vm3 = vcmp.lt.s32.totalorder %v408_v58, 2 }
  0xaf   : > { %v413_v15 = vshrl.u32 %v963_v7, %v410_v2  ;;  %v416_v16 = vshrl.u32 %v964_v9, %v410_v2  ;;  %v419_v17 = vshrl.u32 %v965_v11, %v410_v2  ;;  %v411_v18 = vshrl.u32 %v962_v3, %v410_v2 }
  0xb0   : > { %v422_v19 = vshrl.u32 %v966_v13, %v410_v2  ;;  %v425_v21 = vshrl.u32 %v967_v20, %v410_v2  ;;  %v306_v25 = vsub.s32 32, %v305_v5  ;;  %vm429_vm4 = vcmp.lt.s32.totalorder %v408_v58, 3 }
  0xb1   : > { %v414_v22 = vor.u32 %v413_v15, %v412_v4  ;;  %v417_v23 = vor.u32 %v416_v16, %v415_v8  ;;  %v420_v24 = vor.u32 %v419_v17, %v418_v10  ;;  %vm430_vm5 = vcmp.lt.s32.totalorder %v408_v58, 4 }
  0xb2   : > { %v423_v26 = vor.u32 %v422_v19, %v421_v12  ;;  %v426_v27 = vor.u32 %v425_v21, %v424_v14  ;;  %v308_v39 = vshll.u32 %v962_v3, %v305_v5  ;;  %v309_v43 = vshrl.u32 %v963_v7, %v306_v25 }
  0xb3   : > { %v431_v28 = vsel %vm427_vm2, %v411_v18, %v414_v22  ;;  %v432_v29 = vsel %vm430_vm5, %v420_v24, 2102212464  ;;  %v435_v30 = vsel %vm427_vm2, %v414_v22, %v417_v23  ;;  %v439_v31 = vsel %vm427_vm2, %v417_v23, %v420_v24 }
  0xb4   : > { %v433_v32 = vsel %vm429_vm4, %v417_v23, %v432_v29  ;;  %v436_v36 = vsel %vm430_vm5, %v423_v26, 920167782  ;;  %v440_v37 = vsel %vm430_vm5, %v426_v27, 1326507024  ;;  %v311_v44 = vshll.u32 %v963_v7, %v305_v5 }
  0xb5   : > { %v437_v40 = vsel %vm429_vm4, %v420_v24, %v436_v36  ;;  %v441_v41 = vsel %vm429_vm4, %v423_v26, %v440_v37  ;;  %v434_v45 = vsel %vm428_vm3, %v431_v28, %v433_v32  ;;  %v312_v48 = vshrl.u32 %v964_v9, %v306_v25  ;;  %v280_v26 = vpop.permute.xlu0 %279 }
  0xb6   : > { %v438_v46 = vsel %vm428_vm3, %v435_v30, %v437_v40  ;;  %v442_v47 = vsel %vm428_vm3, %v439_v31, %v441_v41  ;;  %v310_v53 = vor.u32 %v309_v43, %v308_v39  ;;  %v314_v55 = vshll.u32 %v964_v9, %v305_v5 }
  0xb7   : > { %v1134_v49 = vmul.u32.u64.low %v1103_v62, %v442_v47  ;;  %v1135_v50 = vmul.u32.u64.high %v1103_v62, %v442_v47, %v1134_v49  ;;  %v1138_v51 = vmul.u32.u64.low %v1103_v62, %v438_v46  ;;  %v1139_v52 = vmul.u32.u64.high %v1103_v62, %v438_v46, %v1138_v51 }
  0xb8   : > { %v313_v54 = vor.u32 %v312_v48, %v311_v44  ;;  %v315_v56 = vshrl.u32 %v965_v11, %v306_v25  ;;  %v307_v57 = vshrl.u32 %v962_v3, %v306_v25  ;;  %v317_v58 = vshll.u32 %v965_v11, %v305_v5 }
  0xb9   : > { %v318_v59 = vshrl.u32 %v966_v13, %v306_v25  ;;  %v321_v60 = vshrl.u32 %v967_v20, %v306_v25  ;;  %v450_v2 = vmul.u32 %v1103_v62, %v434_v45  ;;  %v320_v8 = vshll.u32 %v966_v13, %v305_v5 }
  0xba   : > { %v316_v4 = vor.u32 %v315_v56, %v314_v55  ;;  %vm323_vm6 = vcmp.lt.s32.totalorder %v1105_v63, 1  ;;  %vm452_vm7 = vc.u32 %v1135_v50, %v1138_v51  ;;  %v453_v10 = vadd.s32 1, %v1139_v52 }
  0xbb   : > { %v319_v12 = vor.u32 %v318_v59, %v317_v58  ;;  %vm324_vm8 = vcmp.lt.s32.totalorder %v1105_v63, 2  ;;  %v322_v14 = vor.u32 %v321_v60, %v320_v8  ;;  %vm325_vm9 = vcmp.lt.s32.totalorder %v1105_v63, 3 }
  0xbc   : > { %vm326_vm10 = vcmp.lt.s32.totalorder %v1105_v63, 4  ;;  %v331_v15 = vsel %vm323_vm6, %v310_v53, %v313_v54  ;;  %v454_v62 = vsel %vm452_vm7, %v453_v10, %v1139_v52  ;;  %v335_v17 = vsel %vm323_vm6, %v313_v54, %v316_v4 }
  0xbd   : > { %v328_v16 = vsel %vm326_vm10, %v316_v4, 2102212464  ;;  %v332_v5 = vsel %vm326_vm10, %v319_v12, 920167782  ;;  %v455_v18 = vadd.s32 %v454_v62, %v450_v2  ;;  %v327_v19 = vsel %vm323_vm6, %v307_v57, %v310_v53 }
  0xbe   : > { %v333_v21 = vsel %vm325_vm9, %v316_v4, %v332_v5  ;;  %v336_v22 = vsel %vm326_vm10, %v322_v14, 1326507024  ;;  %v329_v23 = vsel %vm325_vm9, %v313_v54, %v328_v16  ;;  %vm614_vm11 = vcmp.gt.s32.totalorder %v1111_v6, 0 }
  0xbf   : > { %v334_v24 = vsel %vm324_vm8, %v331_v15, %v333_v21  ;;  %v337_v25 = vsel %vm325_vm9, %v319_v12, %v336_v22  ;;  %v456_v27 = vadd.s32 536870912, %v455_v18  ;;  %v610_v36 = vand.u32 8388607, %v603_v1 }
  0xc0   : > { %v338_v28 = vsel %vm324_vm8, %v335_v17, %v337_v25  ;;  %v1164_v29 = vmul.u32.u64.low %v1107_v0, %v334_v24  ;;  %v1165_v30 = vmul.u32.u64.high %v1107_v0, %v334_v24, %v1164_v29  ;;  %v615_v37 = vsel %vm614_vm11, %v1111_v6, 0 }
  0xc1   : > { %v1169_v31 = vmul.u32.u64.low %v1107_v0, %v338_v28  ;;  %v1170_v32 = vmul.u32.u64.high %v1107_v0, %v338_v28, %v1169_v31  ;;  %v1175_v39 = vshrl.u32 %v456_v27, 30  ;;  %v330_v40 = vsel %vm324_vm8, %v327_v19, %v329_v23 }
  0xc2   : > { %v617_v41 = vand.u32 31, %v615_v37  ;;  %v1180_v43 = vadd.f32 %v280_v26, %v1101_v61  ;;  %v349_v45 = vadd.s32 1, %v1165_v30  ;;  %v346_v46 = vmul.u32 %v1107_v0, %v330_v40 }
  0xc3   : > { %v458_v44 = vshll.u32 %v1175_v39, 30  ;;  %vm348_vm12 = vc.u32 %v1170_v32, %v1164_v29  ;;  %v611_v47 = vor.u32 8388608, %v610_v36  ;;  %v616_v4 = vshrl.u32 %v615_v37, 5 }
  0xc4   : > { %v618_v6 = vsub.s32 32, %v617_v41  ;;  %v350_v49 = vsel %vm348_vm12, %v349_v45, %v1165_v30  ;;  %v502_v63 = vand.u32 2139095040, %v1180_v43  ;;  %v499_v61 = vand.u32 2147483647, %v1180_v43 }
  0xc5   : > { %v459_v48 = vsub.s32 %v455_v18, %v458_v44  ;;  %v351_v52 = vadd.s32 %v350_v49, %v346_v46  ;;  %v1192_v0 = vshll.u32 %v611_v47, 8  ;;  %v620_v8 = vshll.u32 %v962_v3, %v617_v41 }
  0xc6   : > { %v621_v55 = vshrl.u32 %v963_v7, %v618_v6  ;;  %v624_v56 = vshrl.u32 %v964_v9, %v618_v6  ;;  %v627_v58 = vshrl.u32 %v965_v11, %v618_v6  ;;  %v630_v59 = vshrl.u32 %v966_v13, %v618_v6 }
  0xc7   : > { %v461_v53 = vsub.s32 0, %v459_v48  ;;  %v352_v54 = vadd.s32 536870912, %v351_v52  ;;  %v503_v60 = vshrl.u32 %v502_v63, 23  ;;  %v623_v10 = vshll.u32 %v963_v7, %v617_v41 }
  0xc8   : > { %v626_v14 = vshll.u32 %v964_v9, %v617_v41  ;;  %v629_v15 = vshll.u32 %v965_v11, %v617_v41  ;;  %v633_v62 = vshrl.u32 %v967_v20, %v618_v6  ;;  %v451_v16 = vadd.s32 %v1138_v51, %v1135_v50 }
  0xc9   : > { %v799_v57 = vmin.u32 %v461_v53, %v459_v48  ;;  %v1196_v2 = vshrl.u32 %v352_v54, 30  ;;  %v622_v17 = vor.u32 %v621_v55, %v620_v8  ;;  %v625_v18 = vor.u32 %v624_v56, %v623_v10 }
  0xca   : > { %v628_v21 = vor.u32 %v627_v58, %v626_v14  ;;  %v631_v22 = vor.u32 %v630_v59, %v629_v15  ;;  %v632_v23 = vshll.u32 %v966_v13, %v617_v41  ;;  %v481_v24 = vsub.s32 4, %v1175_v39 }
  0xcb   : > { %v463_v12 = vclz %v799_v57  ;;  %v354_v5 = vshll.u32 %v1196_v2, 30  ;;  %v619_v26 = vshrl.u32 %v962_v3, %v618_v6  ;;  %vm635_vm14 = vcmp.lt.s32.totalorder %v616_v4, 1 }
  0xcc   : > { %v634_v51 = vor.u32 %v633_v62, %v632_v23  ;;  %vm636_vm1 = vcmp.lt.s32.totalorder %v616_v4, 2  ;;  %vm637_vm2 = vcmp.lt.s32.totalorder %v616_v4, 3  ;;  %vm638_vm3 = vcmp.lt.s32.totalorder %v616_v4, 4 }
  0xcd   : > { %v800_v19 = vadd.s32 4294967294, %v463_v12  ;;  %v1209_v25 = vsub.s32 %v351_v52, %v354_v5  ;;  %v643_v30 = vsel %vm635_vm14, %v622_v17, %v625_v18  ;;  %v640_v37 = vsel %vm638_vm3, %v628_v21, 2102212464 }
  0xce   : > { %v644_v40 = vsel %vm638_vm3, %v631_v22, 920167782  ;;  %v647_v45 = vsel %vm635_vm14, %v625_v18, %v628_v21  ;;  %v648_v49 = vsel %vm638_vm3, %v634_v51, 1326507024  ;;  %vm293_vm4 = vcmp.lt.s32.totalorder %v1088_v34, 0 }
  0xcf   : > { %vm801_vm0 = vcmp.lt.s32.totalorder %v800_v19, 0  ;;  %v357_v28 = vsub.s32 0, %v1209_v25  ;;  %v645_v44 = vsel %vm637_vm2, %v628_v21, %v644_v40  ;;  %v639_v52 = vsel %vm635_vm14, %v619_v26, %v622_v17 }
  0xd0   : > { %v466_v27 = vsel %vm801_vm0, 0, %v800_v19  ;;  %v646_v6 = vsel %vm636_vm1, %v643_v30, %v645_v44  ;;  %v641_v53 = vsel %vm637_vm2, %v625_v18, %v640_v37  ;;  %v802_v54 = vadd.s32 4294967169, %v503_v60 }
  0xd1   : > { %v467_v31 = vsub.s32 32, %v466_v27  ;;  %v471_v36 = vsub.s32 4294967266, %v466_v27  ;;  %v468_v41 = vshll.u32 %v459_v48, %v466_v27  ;;  %v795_v35 = vmin.u32 %v357_v28, %v1209_v25 }
  0xd2   : > { %v482_v56 = vsel %vm397_vm13, %v481_v24, %v1175_v39  ;;  %v649_v57 = vsel %vm637_vm2, %v631_v22, %v648_v49  ;;  %v1233_v8 = vmul.u32.u64.low %v1192_v0, %v646_v6  ;;  %v1234_v10 = vmul.u32.u64.high %v1192_v0, %v646_v6, %v1233_v8 }
  0xd3   : > { %v469_v46 = vshrl.u32 %v451_v16, %v467_v31  ;;  %v472_v47 = vadd.s32 127, %v471_v36  ;;  %v359_v63 = vclz %v795_v35  ;;  %v650_v59 = vsel %vm636_vm1, %v647_v45, %v649_v57 }
  0xd4   : > { %v642_v14 = vsel %vm636_vm1, %v639_v52, %v641_v53  ;;  %v1239_v60 = vmul.u32.u64.low %v1192_v0, %v650_v59  ;;  %v1240_v15 = vmul.u32.u64.high %v1192_v0, %v650_v59, %v1239_v60  ;;  %v484_v39 = vsel %vm1214_vm15, 0, %v482_v56 }
  0xd5   : > { %v470_v48 = vor.u32 %v469_v46, %v468_v41  ;;  %v473_v55 = vshll.u32 %v472_v47, 23  ;;  %v796_v58 = vadd.s32 4294967294, %v359_v63  ;;  %v347_v62 = vadd.s32 %v1164_v29, %v1170_v32 }
  0xd6   : > { %v509_v16 = vadd.s32 1, %v802_v54  ;;  %v377_v19 = vsub.s32 4, %v1196_v2  ;;  %v658_v22 = vmul.u32 %v1192_v0, %v642_v14  ;;  %v661_v23 = vadd.s32 1, %v1234_v10 }
  0xd7   : > { %v474_v12 = vor.u32 4788187, %v473_v55  ;;  %vm797_vm5 = vcmp.lt.s32.totalorder %v796_v58, 0  ;;  %v477_v17 = vcvt.s32.f32 %v470_v48  ;;  %vm660_vm6 = vc.u32 %v1240_v15, %v1233_v8 }
  0xd8   : > { %v362_v18 = vsel %vm797_vm5, 0, %v796_v58  ;;  %vm510_vm7 = vcmp.gt.s32.totalorder %v509_v16, 0  ;;  %v662_v51 = vsel %vm660_vm6, %v661_v23, %v1234_v10  ;;  %v378_v30 = vsel %vm293_vm4, %v377_v19, %v1196_v2 }
  0xd9   : > { %v475_v5 = vand.u32 2147483647, %v474_v12  ;;  %v363_v21 = vsub.s32 32, %v362_v18  ;;  %v367_v4 = vsub.s32 4294967266, %v362_v18  ;;  %v364_v26 = vshll.u32 %v1209_v25, %v362_v18 }
  0xda   : > { %v511_v27 = vsel %vm510_vm7, %v509_v16, 0  ;;  %v663_v0 = vadd.s32 %v662_v51, %v658_v22  ;;  %v488_v36 = vadd.s32 3, %v484_v39  ;;  %vm1260_vm8 = vcmp.le.f32.partialorder %v291_v38, 0.7853982 }
  0xdb   : > { %v478_v24 = vmul.f32 %v477_v17, %v475_v5  ;;  %v365_v29 = vshrl.u32 %v347_v62, %v363_v21  ;;  %v368_v32 = vadd.s32 127, %v367_v4  ;;  %v513_v31 = vand.u32 31, %v511_v27 }
  0xdc   : > { %v664_v35 = vadd.s32 536870912, %v663_v0  ;;  %v380_v46 = vsel %vm1260_vm8, 0, %v378_v30  ;;  %v506_v6 = vand.u32 8388607, %v499_v61  ;;  %v1273_v38 = vand.u32 3, %v488_v36 }
  0xdd   : > { %v479_v28 = vxor.u32 2147483648, %v478_v24  ;;  %v366_v37 = vor.u32 %v365_v29, %v364_v26  ;;  %v369_v40 = vshll.u32 %v368_v32, 23  ;;  %v514_v44 = vsub.s32 32, %v513_v31 }
  0xde   : > { %v1269_v47 = vshrl.u32 %v664_v35, 30  ;;  %v384_v52 = vadd.s32 3, %v380_v46  ;;  %v525_v56 = vshll.u32 %v965_v11, %v513_v31  ;;  %v1283_v59 = vshrl.u32 %v511_v27, 5 }
  0xdf   : > { %v480_v25 = vsel %vm397_vm13, %v479_v28, %v478_v24  ;;  %v370_v45 = vor.u32 4788187, %v369_v40  ;;  %v373_v63 = vcvt.s32.f32 %v366_v37  ;;  %v517_v50 = vshrl.u32 %v963_v7, %v514_v44 }
  0xe0   : > { %v483_v2 = vsel %vm1214_vm15, %v1086_v33, %v480_v25  ;;  %v666_v53 = vshll.u32 %v1269_v47, 30  ;;  %v520_v54 = vshrl.u32 %v964_v9, %v514_v44  ;;  %v523_v55 = vshrl.u32 %v965_v11, %v514_v44 }
  0xe1   : > { %881 = vcosq.f32 %v483_v2  ;;  %v371_v49 = vand.u32 2147483647, %v370_v45  ;;  %v526_v57 = vshrl.u32 %v966_v13, %v514_v44  ;;  %v516_v10 = vshll.u32 %v962_v3, %v513_v31 }
  0xe2   : > { %883 = vsinq.f32 %v483_v2  ;;  %v1281_v58 = vsub.s32 %v663_v0, %v666_v53  ;;  %v519_v12 = vshll.u32 %v963_v7, %v513_v31  ;;  %vm491_vm9 = vcmp.eq.s32.totalorder %v1273_v38, 0 }
  0xe3   : > { %v374_v48 = vmul.f32 %v373_v63, %v371_v49  ;;  %v522_v60 = vshll.u32 %v964_v9, %v513_v31  ;;  %v527_v39 = vor.u32 %v526_v57, %v525_v56  ;;  %v529_v62 = vshrl.u32 %v967_v20, %v514_v44 }
  0xe4   : > { %vm490_vm10 = vcmp.lt.s32.totalorder %v1273_v38, 2  ;;  %vm494_vm11 = vcmp.eq.s32.totalorder %v1273_v38, 2  ;;  %v669_v11 = vsub.s32 0, %v1281_v58  ;;  %v507_v16 = vor.u32 8388608, %v506_v6 }
  0xe5   : > { %v375_v14 = vxor.u32 2147483648, %v374_v48  ;;  %v518_v5 = vor.u32 %v517_v50, %v516_v10  ;;  %vm487_vm12 = vweird.f32 %v1086_v33  ;;  %v521_v17 = vor.u32 %v520_v54, %v519_v12 }
  0xe6   : > { %v524_v18 = vor.u32 %v523_v55, %v522_v60  ;;  %v528_v9 = vshll.u32 %v966_v13, %v513_v31  ;;  %v1301_v19 = vand.u32 3, %v384_v52  ;;  %v807_v21 = vmin.u32 %v669_v11, %v1281_v58 }
  0xe7   : > { %v376_v7 = vsel %vm293_vm4, %v375_v14, %v374_v48  ;;  %vm534_vm13 = vcmp.lt.s32.totalorder %v1283_v59, 4  ;;  %v659_v4 = vadd.s32 %v1233_v8, %v1240_v15  ;;  %vm531_vm14 = vcmp.lt.s32.totalorder %v1283_v59, 1 }
  0xe8   : > { %v379_v20 = vsel %vm1260_vm8, %v1088_v34, %v376_v7  ;;  %v530_v22 = vor.u32 %v529_v62, %v528_v9  ;;  %v540_v13 = vsel %vm534_vm13, %v527_v39, 920167782  ;;  %v671_v24 = vclz %v807_v21 }
  0xe9   : > { %885 = vcosq.f32 %v379_v20  ;;  %vm533_vm15 = vcmp.lt.s32.totalorder %v1283_v59, 3  ;;  %v539_v32 = vsel %vm531_vm14, %v518_v5, %v521_v17  ;;  %v547_v15 = vshll.u32 %v507_v16, 8 }
  0xea   : > { %887 = vsinq.f32 %v379_v20  ;;  %v541_v8 = vsel %vm533_vm15, %v524_v18, %v540_v13  ;;  %v808_v27 = vadd.s32 4294967294, %v671_v24  ;;  %v515_v28 = vshrl.u32 %v962_v3, %v514_v44 }
  0xeb   : > { %v882_v23 = vpop.eup %881  ;;  %vm532_vm0 = vcmp.lt.s32.totalorder %v1283_v59, 2  ;;  %v536_v0 = vsel %vm534_vm13, %v524_v18, 2102212464  ;;  %v543_v31 = vsel %vm531_vm14, %v521_v17, %v524_v18  ;;  %v544_v36 = vsel %vm534_vm13, %v530_v22, 1326507024 }
  0xec   : > { %v884_v26 = vpop.eup %883  ;;  %v495_v29 = vxor.u32 2147483648, %v882_v23  ;;  %vm809_vm1 = vcmp.lt.s32.totalorder %v808_v27, 0  ;;  %v542_v3 = vsel %vm532_vm0, %v539_v32, %v541_v8  ;;  %v545_v40 = vsel %vm533_vm15, %v527_v39, %v544_v36 }
  0xed   : > { %v492_v51 = vxor.u32 2147483648, %v884_v26  ;;  %v674_v41 = vsel %vm809_vm1, 0, %v808_v27  ;;  %v535_v35 = vsel %vm531_vm14, %v515_v28, %v518_v5  ;;  %v546_v44 = vsel %vm532_vm0, %v543_v31, %v545_v40 }
  0xee   : > { %v496_v30 = vsel %vm494_vm11, %v495_v29, %v884_v26  ;;  %v675_v45 = vsub.s32 32, %v674_v41  ;;  %v679_v46 = vsub.s32 4294967266, %v674_v41  ;;  %v537_v6 = vsel %vm533_vm15, %v521_v17, %v536_v0 }
  0xef   : > { %v493_v37 = vsel %vm491_vm9, %v882_v23, %v492_v51  ;;  %v1346_v38 = vmul.u32.u64.low %v547_v15, %v546_v44  ;;  %v1347_v49 = vmul.u32.u64.high %v547_v15, %v546_v44, %v1346_v38  ;;  %v676_v53 = vshll.u32 %v1281_v58, %v674_v41 }
  0xf0   : > { %v497_v25 = vsel %vm490_vm10, %v493_v37, %v496_v30  ;;  %v1349_v63 = vmul.u32.u64.low %v547_v15, %v542_v3  ;;  %v1350_v52 = vmul.u32.u64.high %v547_v15, %v542_v3, %v1349_v63  ;;  %v677_v50 = vshrl.u32 %v659_v4, %v675_v45 }
  0xf1   : > { %v498_v2 = vsel %vm487_vm12, nan, %v497_v25  ;;  %v680_v33 = vadd.s32 127, %v679_v46  ;;  %v538_v48 = vsel %vm532_vm0, %v535_v35, %v537_v6  ;;  %vm390_vm2 = vcmp.eq.s32.totalorder %v1301_v19, 2 }
  0xf2   : > { %708 = vst [vmem:[%s1343_s20 + $0x8] sm:$0xff] %v498_v2  ;;  %v678_v57 = vor.u32 %v677_v50, %v676_v53  ;;  %vm556_vm3 = vc.u32 %v1347_v49, %v1349_v63  ;;  %v557_v14 = vadd.s32 1, %v1350_v52  ;;  %vm387_vm4 = vcmp.eq.s32.totalorder %v1301_v19, 0 }
  0xf3   : > { %v886_v54 = vpop.eup %885  ;;  %v681_v10 = vshll.u32 %v680_v33, 23  ;;  %v554_v39 = vmul.u32 %v547_v15, %v538_v48  ;;  %vm383_vm5 = vweird.f32 %v1088_v34  ;;  %vm386_vm6 = vcmp.lt.s32.totalorder %v1301_v19, 2 }
  0xf4   : > { %v888_v55 = vpop.eup %887  ;;  %v391_v56 = vxor.u32 2147483648, %v886_v54  ;;  %v558_v62 = vsel %vm556_vm3, %v557_v14, %v1350_v52  ;;  %v685_v5 = vcvt.s32.f32 %v678_v57  ;;  %v689_v18 = vsub.s32 4, %v1269_v47 }
  0xf5   : > { %v388_v12 = vxor.u32 2147483648, %v888_v55  ;;  %v682_v60 = vor.u32 4788187, %v681_v10  ;;  %v559_v7 = vadd.s32 %v558_v62, %v554_v39  ;;  %vm605_vm7 = vcmp.lt.s32.totalorder %v1094_v42, 0 }
  0xf6   : > { %v392_v58 = vsel %vm390_vm2, %v391_v56, %v888_v55  ;;  %v690_v34 = vsel %vm605_vm7, %v689_v18, %v1269_v47  ;;  %vm604_vm8 = vcmp.le.f32.partialorder %v603_v1, 0.7853982  ;;  %v555_v0 = vadd.s32 %v1349_v63, %v1347_v49 }
  0xf7   : > { %v389_v59 = vsel %vm387_vm4, %v886_v54, %v388_v12  ;;  %v683_v16 = vand.u32 2147483647, %v682_v60  ;;  %v560_v20 = vadd.s32 536870912, %v559_v7  ;;  %v692_v23 = vsel %vm604_vm8, 0, %v690_v34 }
  0xf8   : > { %v393_v11 = vsel %vm386_vm6, %v389_v59, %v392_v58  ;;  %v696_v29 = vadd.s32 3, %v692_v23  ;;  %vm695_vm13 = vweird.f32 %v1094_v42  ;;  %vm501_vm14 = vcmp.lt.s32.totalorder %v1180_v43, 0 }
  0xf9   : > { %v394_v17 = vsel %vm383_vm5, nan, %v393_v11  ;;  %v686_v9 = vmul.f32 %v685_v5, %v683_v16  ;;  %v561_v4 = vshrl.u32 %v560_v20, 30  ;;  %vm500_vm15 = vcmp.le.f32.partialorder %v499_v61, 0.7853982 }
  0xfa   : > { %707 = vst [vmem:[%s1343_s20] sm:$0xff] %v394_v17  ;;  %v697_v15 = vand.u32 3, %v696_v29  ;;  %vm591_vm3 = vweird.f32 %v1180_v43 }
  0xfb   : > { %v687_v21 = vxor.u32 2147483648, %v686_v9  ;;  %v562_v22 = vshll.u32 %v561_v4, 30  ;;  %v585_v63 = vsub.s32 4, %v561_v4 }
  0xfc   : > { %vm702_vm10 = vcmp.eq.s32.totalorder %v697_v15, 2  ;;  %vm698_vm11 = vcmp.lt.s32.totalorder %v697_v15, 2  ;;  %vm699_vm12 = vcmp.eq.s32.totalorder %v697_v15, 0 }
  0xfd   : > { %v688_v19 = vsel %vm605_vm7, %v687_v21, %v686_v9  ;;  %v563_v24 = vsub.s32 %v559_v7, %v562_v22 }
  0xfe   : > { %v691_v13 = vsel %vm604_vm8, %v1094_v42, %v688_v19  ;;  %v586_v42 = vsel %vm501_vm14, %v585_v63, %v561_v4 }
  0xff   : > { %889 = vcosq.f32 %v691_v13  ;;  %v565_v26 = vsub.s32 0, %v563_v24  ;;  %v588_v33 = vsel %vm500_vm15, 0, %v586_v42 }
 0x100   : > { %891 = vsinq.f32 %v691_v13  ;;  %v592_v54 = vadd.s32 3, %v588_v33 }
 0x101   : > { %v803_v32 = vmin.u32 %v565_v26, %v563_v24 }
 0x102   : > { %v593_v48 = vand.u32 3, %v592_v54 }
 0x103   : > { %v567_v8 = vclz %v803_v32 }
 0x104   : > { %vm598_vm0 = vcmp.eq.s32.totalorder %v593_v48, 2  ;;  %vm595_vm1 = vcmp.eq.s32.totalorder %v593_v48, 0  ;;  %vm594_vm2 = vcmp.lt.s32.totalorder %v593_v48, 2 }
 0x105   : > { %v804_v51 = vadd.s32 4294967294, %v567_v8 }
 0x107   : > { %vm805_vm9 = vcmp.lt.s32.totalorder %v804_v51, 0 }
 0x108   : > { %v570_v1 = vsel %vm805_vm9, 0, %v804_v51 }
 0x109   : > { %v890_v27 = vpop.eup %889  ;;  %v571_v31 = vsub.s32 32, %v570_v1  ;;  %v575_v36 = vsub.s32 4294967266, %v570_v1  ;;  %v572_v40 = vshll.u32 %v563_v24, %v570_v1 }
 0x10a   : > { %v892_v47 = vpop.eup %891  ;;  %v703_v28 = vxor.u32 2147483648, %v890_v27 }
 0x10b   : > { %v700_v30 = vxor.u32 2147483648, %v892_v47  ;;  %v573_v25 = vshrl.u32 %v555_v0, %v571_v31  ;;  %v576_v41 = vadd.s32 127, %v575_v36 }
 0x10c   : > { %v704_v37 = vsel %vm702_vm10, %v703_v28, %v892_v47 }
 0x10d   : > { %v701_v3 = vsel %vm699_vm12, %v890_v27, %v700_v30  ;;  %v574_v2 = vor.u32 %v573_v25, %v572_v40  ;;  %v577_v45 = vshll.u32 %v576_v41, 23 }
 0x10e   : > { %v705_v35 = vsel %vm698_vm11, %v701_v3, %v704_v37 }
 0x10f   : > { %v706_v44 = vsel %vm695_vm13, nan, %v705_v35  ;;  %v578_v46 = vor.u32 4788187, %v577_v45  ;;  %v581_v38 = vcvt.s32.f32 %v574_v2 }
 0x110   : > { %710 = vst [vmem:[%s1343_s20 + $0x18] sm:$0xff] %v706_v44 }
 0x111   : > { %v579_v6 = vand.u32 2147483647, %v578_v46 }
 0x113   : > { %v582_v49 = vmul.f32 %v581_v38, %v579_v6 }
 0x115   : > { %v583_v52 = vxor.u32 2147483648, %v582_v49 }
 0x117   : > { %v584_v53 = vsel %vm501_vm14, %v583_v52, %v582_v49 }
 0x118   : > { %v587_v50 = vsel %vm500_vm15, %v1180_v43, %v584_v53 }
 0x119   : > { %893 = vcosq.f32 %v587_v50 }
 0x11a   : > { %895 = vsinq.f32 %v587_v50 }
 0x123   : > { %v894_v55 = vpop.eup %893 }
 0x124   : > { %v896_v56 = vpop.eup %895  ;;  %v599_v57 = vxor.u32 2147483648, %v894_v55 }
 0x125   : > { %v596_v10 = vxor.u32 2147483648, %v896_v56 }
 0x126   : > { %v600_v61 = vsel %vm598_vm0, %v599_v57, %v896_v56 }
 0x127   : > { %v597_v12 = vsel %vm595_vm1, %v894_v55, %v596_v10 }
 0x128   : > { %v601_v14 = vsel %vm594_vm2, %v597_v12, %v600_v61 }
 0x129   : > { %v602_v58 = vsel %vm591_vm3, nan, %v601_v14 }
 0x12a   : > { %709 = vst [vmem:[%s1343_s20 + $0x10] sm:$0xff] %v602_v58 }
 0x12b   : > { %910 = shalt.err (!%p907_p3)
}
 0x12c   : > { %s911_s8 = scalar_lea.hbm %s1381_s29, 512  ;;  %s915_s11 = scalar_lea.hbm %s1434_s4, 1024 }
 0x12d   : > { %p912_p4 = scmp.ne.s32.totalorder %s1381_s29, %s911_s8  ;;  %p916_p9 = scmp.lt.u32.totalorder %s1381_s29, %s1434_s4 }
 0x12e   : > { %p917_p10 = scmp.lt.u32.totalorder %s915_s11, %s911_s8  ;;  %p919_p12 = scmp.lt.u32.totalorder %s911_s8, %s1381_s29 }
 0x12f   : > { %p913_p7 = pnand %p912_p4, %p1035_p5 }
 0x130   : > { %p918_p11 = por %p917_p10, %p916_p9 }
 0x131   : > { %p914_p8 = pneg %p913_p7 }
 0x132   : > { %p920_p13 = por %p919_p12, %p918_p11 }
 0x134   : > { %p921_p0 = pnand %p920_p13, %p914_p8 }
 0x136   : > { %924 = shalt.err (!%p921_p0)
}
 0x137   : > { %s969_s14 = smov 128   ;;  %s970_s20 = smov 256  }
 0x138   : > { %s971_s22 = smov 8  }
 0x139   : > { %830 = dma.vmem_to_hbm [thread:$0]  (%p1035_p5), %s1383_s23, 512, %s1381_s29, %s1389_s19, %s969_s14, %s970_s20, %s971_s22  }
 0x13a PF: > { %p836_p1 = scmp.ge.s32.totalorder %s959_s18, 2  ;;  %s739_s27 = sand.u32 1, %s947_s15  }
 0x13b   : > { %s740_s28 = scalar_lea.sflag [#allocation3], %s739_s27 }
 0x13c   : > { %p833_p2 = pnand %p836_p1, %p1039_p6 }
 0x13e   : > { %942 = dma.done.wait (!%p833_p2), %s740_s28, 512  }
 0x13f   : > { %944 = vsyncadd (!%p833_p2), %s740_s28, 4294966784  ;;  %p14_p3 = scmp.ge.s32.totalorder %s1022_s21, 4   ;;  %s1441_s15 = smov %s951_s16 }
 0x140   : > { %s1442_s16 = smov %s955_s17  ;;  %s1443_s17 = smov %s1033_s24 }
 0x141   : > { %s1444_s18 = smov %s1022_s21  ;;  %16 = sbr.rel (!%p14_p3) target bundleno = 3 (0x3), region = 71 }
 0x148   :  { %745 = vsyncpa [#allocation3], 1 }
 0x149   :  { %747 = vsyncpa [#allocation3 + $0x1], 1 }

</bundles_post_ra>
